<compile_context>
chip_gen: v7x
topology: tpu7x:2x2x1
jax: 0.10.0
libtpu: 0.0.40
codegen_flags: <defaults>
</compile_context>

<pallas_src>
import jax
import jax.numpy as jnp
from jax.experimental import pallas as pl
from jax.experimental.pallas import tpu as pltpu


def _rand_onehot_kernel(bits_ref, actn_t_ref, lang_t_ref):
    """One grid step over a tile of TN rows (rows live on the lane axis).

    bits_ref   : int32   (2, TN)          raw random bits; row 0 -> actn,
                                           row 1 -> lang
    actn_t_ref : float32 (actn_size, TN)  transposed one-hot output
    lang_t_ref : float32 (lang_size, TN)  transposed one-hot output
    """
    a = actn_t_ref.shape[0]
    l = lang_t_ref.shape[0]
    tn = actn_t_ref.shape[1]

    def onehot_t(bits_row, k, out_ref):
        # 23 uniform bits -> index in [0, k) via a single f32 multiply
        # (no integer div/mod sequence on the VPU/scalar path).  The min()
        # clamp guards the theoretical f32-rounding edge at the top of the
        # range; it also makes the mapping bias <= k/2^23 (vs k/2^31 for %).
        u = (bits_row & 0x7FFFFF).astype(jnp.float32)             # (1, TN) in [0, 2^23)
        idx = (u * (float(k) / 8388608.0)).astype(jnp.int32)      # (1, TN) in [0, k)
        idx = jnp.minimum(idx, k - 1)
        # Class id per sublane row; compare broadcasts idx over sublanes only
        # (no lane extract, no XLU lane broadcast).
        rows = jax.lax.broadcasted_iota(jnp.int32, (k, tn), 0)
        out_ref[...] = (rows == idx).astype(jnp.float32)          # lane-dense store

    onehot_t(bits_ref[0:1, :], a, actn_t_ref)
    onehot_t(bits_ref[1:2, :], l, lang_t_ref)


def _round_up(x, m):
    return ((x + m - 1) // m) * m


def random_model_forward(x, actn_size, lang_size, key=None, seed=0, row_tile=512):
    """JAX/Pallas equivalent of RandomModel.forward / RandomModel.step.

    Args:
      x: float array (B, S, C, H, W) for the sequence path or (B, C, H, W) for
         the single-step path.  Values are unused (only the shape matters),
         exactly as in the reference PyTorch module; x is never DMA'd into the
         kernel.
      actn_size, lang_size: class counts.
      key: optional jax PRNG key (else derived from `seed`).
      row_tile: rows per grid block (kept a multiple of 128; 512 default fits
         comfortably in v5e/v6e/v7x VMEM with double buffering).

    Returns:
      (actn, (lang,)) with actn: float32 (N, actn_size), lang: float32
      (N, lang_size), N = B (4-D input) or B*S (5-D input) -- the reference
      does NOT reshape back to (B, S, ...) before returning.
    """
    if x.ndim == 4:
        n = x.shape[0]
    else:
        n = x.shape[0] * x.shape[1]

    if key is None:
        key = jax.random.PRNGKey(seed)

    # Row tile: multiple of 128 lanes; pad N up so the grid divides evenly.
    tn = min(int(row_tile), _round_up(n, 128))
    n_pad = _round_up(n, tn)
    grid = (n_pad // tn,)

    # Single random-bits draw covering both outputs (one 32-bit word per
    # output element).  Bitcast to int32 for the most battle-tested VPU path.
    bits = jax.random.bits(key, (2, n_pad), dtype=jnp.uint32)
    bits = jax.lax.bitcast_convert_type(bits, jnp.int32)

    actn_t, lang_t = pl.pallas_call(
        _rand_onehot_kernel,
        grid=grid,
        in_specs=[pl.BlockSpec((2, tn), lambda i: (0, i))],
        out_specs=(
            pl.BlockSpec((actn_size, tn), lambda i: (0, i)),
            pl.BlockSpec((lang_size, tn), lambda i: (0, i)),
        ),
        out_shape=(
            jax.ShapeDtypeStruct((actn_size, n_pad), jnp.float32),
            jax.ShapeDtypeStruct((lang_size, n_pad), jnp.float32),
        ),
        compiler_params=pltpu.CompilerParams(
            dimension_semantics=("parallel",)),
    )(bits)

    # Cheap layout fixup outside the kernel: (K, N_pad) -> (N, K).
    actn = actn_t.T[:n]
    lang = lang_t.T[:n]

    # output_fxn == NullOp -> identity on actn.
    return actn, (lang,)


if __name__ == "__main__":
    # Small shapes consistent with Model.forward: x is (B, S, C, H, W).
    B, S, C, H, W = 2, 8, 4, 16, 16
    ACTN_SIZE = 6
    LANG_SIZE = 10

    key = jax.random.PRNGKey(0)
    kx, kr = jax.random.split(key)
    x = jax.random.normal(kx, (B, S, C, H, W), dtype=jnp.float32)

    actn, (lang,) = random_model_forward(x, ACTN_SIZE, LANG_SIZE, key=kr)
    actn = jax.block_until_ready(actn)
    lang = jax.block_until_ready(lang)

    # Shapes match the reference semantics and every row is one-hot.
    assert actn.shape == (B * S, ACTN_SIZE), actn.shape
    assert lang.shape == (B * S, LANG_SIZE), lang.shape
    assert bool(jnp.all(actn.sum(axis=-1) == 1.0))
    assert bool(jnp.all(lang.sum(axis=-1) == 1.0))
    assert bool(jnp.all((actn == 0.0) | (actn == 1.0)))
    assert bool(jnp.all((lang == 0.0) | (lang == 1.0)))

    # Also exercise the 4-D `step` path: (B, C, H, W) -> (B, K) / (B, L).
    a4, (l4,) = random_model_forward(x[:, 0], ACTN_SIZE, LANG_SIZE, key=kr)
    a4 = jax.block_until_ready(a4)
    assert a4.shape == (B, ACTN_SIZE), a4.shape
    assert l4.shape == (B, LANG_SIZE), l4.shape
    assert bool(jnp.all(a4.sum(axis=-1) == 1.0))
    assert bool(jnp.all(l4.sum(axis=-1) == 1.0))

    print("KERNEL_OK")
</pallas_src>

<mosaic_0001>
module attributes {stable_mosaic.version = 11 : i64} {
  func.func @_rand_onehot_kernel(%arg0: i32, %arg1: memref<2x128xi32, #tpu.memory_space<vmem>>, %arg2: memref<6x128xf32, #tpu.memory_space<vmem>>, %arg3: memref<10x128xf32, #tpu.memory_space<vmem>>) attributes {dimension_semantics = [#tpu.dimension_semantics<parallel>], iteration_bounds = array<i64: 1>, scalar_prefetch = 0 : i64, scratch_operands = 0 : i64, tpu.core_type = #tpu.core_type<tc>, window_params = [{transform_indices = @transform_0, window_bounds = array<i64: 2, 128>}, {transform_indices = @transform_1, window_bounds = array<i64: 6, 128>}, {transform_indices = @transform_2, window_bounds = array<i64: 10, 128>}]} {
    %c0 = arith.constant 0 : index
    %c0_0 = arith.constant 0 : index
    %0 = vector.load %arg1[%c0, %c0_0] : memref<2x128xi32, #tpu.memory_space<vmem>>, vector<1x128xi32>
    %c8388607_i32 = arith.constant 8388607 : i32
    %1 = vector.broadcast %c8388607_i32 : i32 to vector<1x128xi32>
    %2 = arith.andi %0, %1 : vector<1x128xi32>
    %3 = arith.sitofp %2 : vector<1x128xi32> to vector<1x128xf32>
    %cst = arith.constant 7.15255737E-7 : f32
    %4 = vector.broadcast %cst : f32 to vector<1x128xf32>
    %5 = arith.mulf %3, %4 : vector<1x128xf32>
    %6 = arith.fptosi %5 : vector<1x128xf32> to vector<1x128xi32>
    %c5_i32 = arith.constant 5 : i32
    %7 = vector.broadcast %c5_i32 : i32 to vector<1x128xi32>
    %8 = arith.minsi %6, %7 : vector<1x128xi32>
    %9 = tpu.iota {dimensions = array<i32: 0>} : vector<6x128xi32>
    %10 = vector.broadcast %8 : vector<1x128xi32> to vector<6x128xi32>
    %11 = arith.cmpi eq, %9, %10 : vector<6x128xi32>
    %12 = arith.extui %11 : vector<6x128xi1> to vector<6x128xi32>
    %13 = arith.sitofp %12 : vector<6x128xi32> to vector<6x128xf32>
    %c0_1 = arith.constant 0 : index
    %c0_2 = arith.constant 0 : index
    %14 = vector.load %arg2[%c0_1, %c0_2] : memref<6x128xf32, #tpu.memory_space<vmem>>, vector<6x128xf32>
    tpu.vector_store %arg2[%c0_1, %c0_2], %13 {strides = array<i32>} : memref<6x128xf32, #tpu.memory_space<vmem>>, vector<6x128xf32>,
    %c1 = arith.constant 1 : index
    %c0_3 = arith.constant 0 : index
    %15 = vector.load %arg1[%c1, %c0_3] : memref<2x128xi32, #tpu.memory_space<vmem>>, vector<1x128xi32>
    %c8388607_i32_4 = arith.constant 8388607 : i32
    %16 = vector.broadcast %c8388607_i32_4 : i32 to vector<1x128xi32>
    %17 = arith.andi %15, %16 : vector<1x128xi32>
    %18 = arith.sitofp %17 : vector<1x128xi32> to vector<1x128xf32>
    %cst_5 = arith.constant 1.1920929E-6 : f32
    %19 = vector.broadcast %cst_5 : f32 to vector<1x128xf32>
    %20 = arith.mulf %18, %19 : vector<1x128xf32>
    %21 = arith.fptosi %20 : vector<1x128xf32> to vector<1x128xi32>
    %c9_i32 = arith.constant 9 : i32
    %22 = vector.broadcast %c9_i32 : i32 to vector<1x128xi32>
    %23 = arith.minsi %21, %22 : vector<1x128xi32>
    %24 = tpu.iota {dimensions = array<i32: 0>} : vector<10x128xi32>
    %25 = vector.broadcast %23 : vector<1x128xi32> to vector<10x128xi32>
    %26 = arith.cmpi eq, %24, %25 : vector<10x128xi32>
    %27 = arith.extui %26 : vector<10x128xi1> to vector<10x128xi32>
    %28 = arith.sitofp %27 : vector<10x128xi32> to vector<10x128xf32>
    %c0_6 = arith.constant 0 : index
    %c0_7 = arith.constant 0 : index
    %29 = vector.load %arg3[%c0_6, %c0_7] : memref<10x128xf32, #tpu.memory_space<vmem>>, vector<10x128xf32>
    tpu.vector_store %arg3[%c0_6, %c0_7], %28 {strides = array<i32>} : memref<10x128xf32, #tpu.memory_space<vmem>>, vector<10x128xf32>,
    return
  }
  func.func @transform_0(%arg0: i32) -> (i32, i32) {
    %c0_i32 = arith.constant 0 : i32
    %c0_i32_0 = arith.constant 0 : i32
    return %c0_i32, %arg0 : i32, i32
  }
  func.func @transform_1(%arg0: i32) -> (i32, i32) {
    %c0_i32 = arith.constant 0 : i32
    %c0_i32_0 = arith.constant 0 : i32
    return %c0_i32, %arg0 : i32, i32
  }
  func.func @transform_2(%arg0: i32) -> (i32, i32) {
    %c0_i32 = arith.constant 0 : i32
    %c0_i32_0 = arith.constant 0 : i32
    return %c0_i32, %arg0 : i32, i32
  }
}

</mosaic_0001>

<bundles_post_ra>
// kernel: tpu_custom_call.1
= control target key start
LH: loop header
LB: loop body
LE: loop exit
PB: predicated region body
PF: predicated region fallthrough
CT: control target
= control target key end

     0   :  { %8 = vsyncpa [#allocation3], 0  ;;  %s241_s0 = inlined_call_operand.hbm [shape: s32[2,128], index: 0, kind: input, shape index: {}]   ;;  %s242_s1 = inlined_call_operand.hbm [shape: f32[6,128], index: 1, kind: output, shape index: {0}]   ;;  %s243_s2 = inlined_call_operand.hbm [shape: f32[10,128], index: 2, kind: output, shape index: {1}]  }
   0x1   :  { %9 = vsyncpa [#allocation4], 0 }
   0x2   :  { %10 = vsyncpa [#allocation7], 0  ;;  %s177_s9 = smov [#allocation2]   ;;  %s105_s13 = scalar_lea.hbm %s241_s0, 32 }
   0x3   :  { %s17_s10 = sshll.u32 %s177_s9, 4  ;;  %p106_p0 = scmp.ne.s32.totalorder %s241_s0, %s105_s13  ;;  %s18_s10 = int_to_ptr.vmem [resolvable:$true] %s17_s10 }
   0x4   :  { %p109_p1 = scmp.lt.u32.totalorder %s105_s13, %s241_s0 }
   0x6   :  { %p111_p2 = pnand %p109_p1, %p106_p0 }
   0x8   :  { %114 = shalt.err (!%p111_p2)
}
   0x9   :  { %s115_s18 = scalar_lea.vmem %s18_s10, 32  ;;  %p120_p4 = scmp.lt.s32.totalorder %s18_s10, %s18_s10 }
   0xa   :  { %p116_p3 = scmp.ne.s32.totalorder %s18_s10, %s115_s18  ;;  %p121_p5 = scmp.lt.s32.totalorder %s115_s18, %s115_s18 }
   0xc   :  { %p122_p6 = por %p121_p5, %p120_p4 }
   0xe   :  { %p123_p7 = pnand %p122_p6, %p116_p3 }
  0x10   :  { %126 = shalt.err (!%p123_p7)
}
  0x11   :  { %20 = dma.hbm_to_vmem [thread:$0]  %s241_s0, 32, %s18_s10, [#allocation3]  }
  0x12   :  { %171 = dma.done.wait [#allocation3], 32  }
  0x13   :  { %172 = vsyncadd [#allocation3], 4294967264  ;;  %v24_v0 = vld [vmem:[#allocation2] sm:$0x1]  ;;  %v41_v1 = vld [vmem:[#allocation2 + $0x1] sm:$0x1]  ;;  %v31_v3 = vlaneseq }
  0x14   :  { %v25_v2 = vand.u32 8388607, %v24_v0  ;;  %v42_v4 = vand.u32 8388607, %v41_v1  ;;  %s178_s0 = smov [#allocation5]   ;;  %s179_s22 = smov [#allocation6]  }
  0x15   :  { %v32_v8 = vshrl.u32 %v31_v3, 7  ;;  %s67_s21 = sshll.u32 %s178_s0, 4  ;;  %s76_s23 = sshll.u32 %s179_s22, 4  ;;  %v180_v20 = vmov 0.0   ;;  %s68_s21 = int_to_ptr.vmem [resolvable:$true] %s67_s21  ;;  %s210_s23 = int_to_ptr.vmem [resolvable:$true] %s76_s23 }
  0x16   :  { %v26_v5 = vcvt.s32.f32 %v25_v2  ;;  %v43_v6 = vcvt.s32.f32 %v42_v4  ;;  %s127_s24 = scalar_lea.vmem %s68_s21, 128  ;;  %p132_p9 = scmp.lt.s32.totalorder %s68_s21, %s68_s21 }
  0x17   :  { %v35_v13 = vsub.s32 0, %v32_v8  ;;  %v48_v15 = vadd.s32 8, %v32_v8  ;;  %p128_p8 = scmp.ne.s32.totalorder %s68_s21, %s127_s24  ;;  %p133_p10 = scmp.lt.s32.totalorder %s127_s24, %s127_s24 }
  0x18   :  { %v27_v7 = vmul.f32 7.1525574e-07, %v26_v5  ;;  %v44_v9 = vmul.f32 1.1920929e-06, %v43_v6 }
  0x19   :  { %p134_p11 = por %p133_p10, %p132_p9 }
  0x1a   :  { %v95_v10 = vtrunc.f32 %v27_v7  ;;  %v97_v11 = vtrunc.f32 %v44_v9 }
  0x1b   :  { %p135_p12 = pnand %p134_p11, %p128_p8 }
  0x1c   :  { %v96_v12 = vcvt.f32.s32 %v95_v10  ;;  %v98_v14 = vcvt.f32.s32 %v97_v11 }
  0x1e   :  { %vm29_vm0 = vcmp.lt.s32.totalorder %v96_v12, 5  ;;  %vm46_vm1 = vcmp.lt.s32.totalorder %v98_v14, 9 }
  0x1f   :  { %v30_v16 = vsel %vm29_vm0, %v96_v12, 5  ;;  %v47_v17 = vsel %vm46_vm1, %v98_v14, 9 }
  0x20   :  { %v36_v18 = vrot.slane %v30_v16, %v35_v13  ;;  %v52_v19 = vrot.slane %v47_v17, %v35_v13 }
  0x22   :  { %vm37_vm2 = vcmp.eq.s32.totalorder %v32_v8, %v36_v18  ;;  %vm53_vm3 = vcmp.eq.s32.totalorder %v32_v8, %v52_v19  ;;  %vm54_vm4 = vcmp.eq.s32.totalorder %v48_v15, %v52_v19 }
  0x23   :  { %v92_v21 = vsel %vm37_vm2, 1.0, %v180_v20  ;;  %v93_v22 = vsel %vm53_vm3, 1.0, %v180_v20  ;;  %v94_v23 = vsel %vm54_vm4, 1.0, %v180_v20 }
  0x24   :  { %40 = vst [vmem:[#allocation5] sm:$0x3f] %v92_v21  ;;  %59 = vst [vmem:[#allocation6] sm:$0xff] %v93_v22 }
  0x25   :  { %60 = vst [vmem:[#allocation6 + $0x8] sm:$0x3] %v94_v23 }
  0x26   :  { %138 = shalt.err (!%p135_p12)
}
  0x27   :  { %s139_s27 = scalar_lea.hbm %s242_s1, 128 }
  0x28   :  { %p140_p13 = scmp.ne.s32.totalorder %s242_s1, %s139_s27  ;;  %p143_p0 = scmp.lt.u32.totalorder %s139_s27, %s242_s1 }
  0x2a   :  { %p145_p1 = pnand %p143_p0, %p140_p13 }
  0x2c   :  { %148 = shalt.err (!%p145_p1)
}
  0x2d   :  { %70 = dma.vmem_to_hbm [thread:$0]  %s68_s21, 128, %s242_s1, [#allocation4]  }
  0x2e   :  { %s149_s6 = scalar_lea.vmem %s210_s23, 256  ;;  %p154_p3 = scmp.lt.s32.totalorder %s210_s23, %s210_s23 }
  0x2f   :  { %p150_p2 = scmp.ne.s32.totalorder %s210_s23, %s149_s6  ;;  %p155_p4 = scmp.lt.s32.totalorder %s149_s6, %s149_s6 }
  0x31   :  { %p156_p5 = por %p155_p4, %p154_p3 }
  0x33   :  { %p157_p6 = pnand %p156_p5, %p150_p2 }
  0x35   :  { %160 = shalt.err (!%p157_p6)
}
  0x36   :  { %s161_s9 = scalar_lea.hbm %s243_s2, 256 }
  0x37   :  { %p162_p7 = scmp.ne.s32.totalorder %s243_s2, %s161_s9  ;;  %p165_p8 = scmp.lt.u32.totalorder %s161_s9, %s243_s2 }
  0x39   :  { %p167_p9 = pnand %p165_p8, %p162_p7 }
  0x3b   :  { %170 = shalt.err (!%p167_p9)
}
  0x3c   :  { %s181_s1 = smov 128   ;;  %s182_s14 = smov 8  }
  0x3d   :  { %82 = dma.vmem_to_hbm [thread:$0]  %s210_s23, 256, %s243_s2, [#allocation7], %s181_s1, %s181_s1, %s182_s14  }
  0x3e   :  { %173 = dma.done.wait [#allocation4], 128  }
  0x3f   :  { %174 = vsyncadd [#allocation4], 4294967168 }
  0x40   :  { %175 = dma.done.wait [#allocation7], 256  }
  0x41   :  { %176 = vsyncadd [#allocation7], 4294967040 }
  0x42   :  { %89 = vsyncpa [#allocation3], 1 }
  0x43   :  { %90 = vsyncpa [#allocation4], 1 }
  0x44   :  { %91 = vsyncpa [#allocation7], 1 }

</bundles_post_ra>
